<compile_context>
chip_gen: v5e
topology: v5e:2x2
jax: 0.10.0
libtpu: 0.0.40
codegen_flags: <defaults>
</compile_context>

<pallas_src>
import functools
import math

import jax
import jax.numpy as jnp
from jax import lax
from jax.experimental import pallas as pl
from jax.experimental.pallas import tpu as pltpu

LOG_2PI = math.log(2.0 * math.pi)
LANES = 128


# ----------------------------- kernel bodies ------------------------------- #

def _fused_forward(x, w_ref, b_all):
    """Fused actor||critic MLP. x: (TB, 128) f32.  Returns (TB, 128) f32 with
    actor pre-tanh logits in lanes [0:A] and the critic value in lane A."""
    h = x
    for l in range(4):
        w = w_ref[l]                                    # (128, 128) bf16 tile
        h = jnp.dot(h.astype(jnp.bfloat16), w,
                    preferred_element_type=jnp.float32) + b_all[l:l + 1, :]
        if l < 3:
            h = jnp.maximum(h, 0.0)
    return h


def evaluate_kernel(state_ref, action_ref, w_ref, aux_ref, out_ref, *, action_dim):
    aux = aux_ref[...]                 # (8,128) f32: biases / inv_var / consts
    b_all = aux[0:4, :]
    inv_var = aux[4:5, :]              # zeros beyond lane A
    c_logp = aux[6:7, :]               # log|Sigma| + d*log(2pi), lane-constant
    c_ent = aux[7:8, :]                # entropy value, lane-constant

    out4 = _fused_forward(state_ref[...], w_ref, b_all)        # (TB,128)
    mean = jnp.tanh(out4)                                       # actor mean in lanes 0:A

    lane = lax.broadcasted_iota(jnp.int32, out4.shape, 1)

    diff = action_ref[...] - mean                               # padded lanes contribute 0
    maha = jnp.sum(diff * diff * inv_var, axis=-1, keepdims=True)   # (TB,1)
    logp = -0.5 * (maha + c_logp)                               # (TB,128), lane-constant
    value = jnp.sum(jnp.where(lane == action_dim, out4, 0.0),
                    axis=-1, keepdims=True)                     # (TB,1) critic value

    packed = jnp.where(lane == 0, logp, 0.0)
    packed = jnp.where(lane == 1, value, packed)
    packed = jnp.where(lane == 2, c_ent, packed)
    out_ref[...] = packed              # single lane-dense unmasked store


def act_kernel(state_ref, noise_ref, w_ref, aux_ref, out_ref, *, action_dim):
    aux = aux_ref[...]
    b_all = aux[0:4, :]
    sqrt_var = aux[5:6, :]             # zeros beyond lane A
    c_logp = aux[6:7, :]

    out4 = _fused_forward(state_ref[...], w_ref, b_all)
    mean = jnp.tanh(out4)
    noise = noise_ref[...]             # zero-padded beyond lane A by the wrapper
    action = mean + sqrt_var * noise   # reparameterized sample (lanes 0:A)

    # diff = action - mean = sqrt(var)*noise  =>  diff^2/var = noise^2
    maha = jnp.sum(noise * noise, axis=-1, keepdims=True)       # (TB,1)
    logp = -0.5 * (maha + c_logp)                               # (TB,128)

    lane = lax.broadcasted_iota(jnp.int32, out4.shape, 1)
    packed = jnp.where(lane == action_dim, logp, action)        # lanes 0:A action, lane A logp
    out_ref[...] = packed


# ------------------------------ wrappers ------------------------------------ #

def _round_up(n, m):
    return ((n + m - 1) // m) * m


def _pad_lanes(x):
    return jnp.pad(x, ((0, 0), (0, LANES - x.shape[1])))


def _pad_rows(x, rows):
    return jnp.pad(x, ((0, rows - x.shape[0]), (0, 0)))


def _call(kernel_body, params, rows_a, rows_b):
    """Shared launcher: 2 batch-tiled (B,128) inputs + resident weight/aux slabs
    -> 1 lane-dense (B_pad,128) output."""
    b = rows_a.shape[0]
    tb = min(256, _round_up(b, 8))
    b_pad = _round_up(b, tb)
    a_p = _pad_rows(_pad_lanes(rows_a), b_pad)
    b_p = _pad_rows(_pad_lanes(rows_b), b_pad)
    kernel = functools.partial(kernel_body, action_dim=params["action_dim"])

    out = pl.pallas_call(
        kernel,
        out_shape=jax.ShapeDtypeStruct((b_pad, LANES), jnp.float32),
        grid_spec=pltpu.PrefetchScalarGridSpec(
            num_scalar_prefetch=0,
            grid=(b_pad // tb,),
            in_specs=[
                pl.BlockSpec((tb, LANES), lambda i: (i, 0)),            # state
                pl.BlockSpec((tb, LANES), lambda i: (i, 0)),            # action / noise
                pl.BlockSpec((4, LANES, LANES), lambda i: (0, 0, 0)),   # weight slab (resident)
                pl.BlockSpec((8, LANES), lambda i: (0, 0)),             # bias+dist aux (resident)
            ],
            out_specs=pl.BlockSpec((tb, LANES), lambda i: (i, 0)),
        ),
        compiler_params=pltpu.CompilerParams(
            dimension_semantics=("parallel",)),
    )(a_p, b_p, params["w_slab"], params["aux"])
    return out, b


def evaluate_fn(params, state, action):
    """Mirrors ActorCritic.evaluate(state, action)."""
    out, b = _call(evaluate_kernel, params, state, action)
    return out[:b, 0], out[:b, 1], out[:b, 2]          # logprobs, squeezed value, entropy


def act_fn(params, state, noise):
    """Mirrors the actor/sampling part of ActorCritic.act (VGG handled outside)."""
    a_dim = params["action_dim"]
    out, b = _call(act_kernel, params, state, noise)
    return out[:b, :a_dim], out[:b, a_dim]              # action, logprob


# --------------------------- parameter setup -------------------------------- #

def _init_linear(key, fan_in, fan_out):
    # PyTorch nn.Linear default init: U(-1/sqrt(fan_in), 1/sqrt(fan_in))
    kw, kb = jax.random.split(key)
    bound = 1.0 / math.sqrt(fan_in)
    w = jax.random.uniform(kw, (fan_in, fan_out), jnp.float32, -bound, bound)
    b = jax.random.uniform(kb, (fan_out,), jnp.float32, -bound, bound)
    return w, b


def pack_params(key, state_dim, emb_size, action_dim, action_std):
    emb_ds = emb_size // 4
    E, D, A, S = emb_size, emb_ds, action_dim, state_dim
    assert S <= LANES and 2 * E <= LANES and 2 * D <= LANES and A + 1 <= LANES, \
        "fused-lane packing requires all layer widths to fit in 128 lanes"

    keys = jax.random.split(key, 8)
    actor_dims = [(S, E), (E, E), (E, D), (D, A)]
    critic_dims = [(S, E), (E, E), (E, D), (D, 1)]
    actor = [_init_linear(k, i, o) for k, (i, o) in zip(keys[:4], actor_dims)]
    critic = [_init_linear(k, i, o) for k, (i, o) in zip(keys[4:], critic_dims)]
    (aw1, ab1), (aw2, ab2), (aw3, ab3), (aw4, ab4) = actor
    (cw1, cb1), (cw2, cb2), (cw3, cb3), (cw4, cb4) = critic

    # Block-diagonal fused weight slab: actor in lanes [0:*], critic in lanes [*:2*].
    W = jnp.zeros((4, LANES, LANES), jnp.float32)
    W = W.at[0, :S, :E].set(aw1).at[0, :S, E:2 * E].set(cw1)
    W = W.at[1, :E, :E].set(aw2).at[1, E:2 * E, E:2 * E].set(cw2)
    W = W.at[2, :E, :D].set(aw3).at[2, E:2 * E, D:2 * D].set(cw3)
    W = W.at[3, :D, :A].set(aw4).at[3, D:2 * D, A:A + 1].set(cw4)

    # Aux slab: rows 0-3 fused biases, 4 inv_var, 5 sqrt_var, 6/7 dist constants.
    aux = jnp.zeros((8, LANES), jnp.float32)
    aux = aux.at[0, :E].set(ab1).at[0, E:2 * E].set(cb1)
    aux = aux.at[1, :E].set(ab2).at[1, E:2 * E].set(cb2)
    aux = aux.at[2, :D].set(ab3).at[2, D:2 * D].set(cb3)
    aux = aux.at[3, :A].set(ab4).at[3, A:A + 1].set(cb4)

    var = jnp.full((A,), action_std * action_std, jnp.float32)
    log_det = jnp.sum(jnp.log(var))
    c_logp = log_det + A * LOG_2PI
    c_ent = 0.5 * A * (1.0 + LOG_2PI) + 0.5 * log_det
    aux = aux.at[4, :A].set(1.0 / var)
    aux = aux.at[5, :A].set(jnp.sqrt(var))
    aux = aux.at[6, :].set(c_logp)
    aux = aux.at[7, :].set(c_ent)

    return {"w_slab": W.astype(jnp.bfloat16), "aux": aux, "action_dim": A}


# --------------------------------- main ------------------------------------- #

if __name__ == "__main__":
    key = jax.random.PRNGKey(0)

    batch = 8
    feat_dim = 8          # stand-in for the 512-d avg-pooled VGG feature vector
    raw_state_dim = 8
    state_dim = feat_dim + 3 * raw_state_dim   # cat(image_feat, state, state, state) -> 32
    emb_size = 32
    action_dim = 4
    action_std = 0.5

    kp, kf, ks, ka, kn = jax.random.split(key, 5)
    params = pack_params(kp, state_dim, emb_size, action_dim, action_std)

    # --- act() path (batch of 1, matching rgb.unsqueeze(0) semantics) ---
    # TODO(synk): vgg.features + avg_pool2d replaced by a synthetic pooled feature.
    image_feat = jax.random.normal(kf, (feat_dim,), jnp.float32)
    raw_state = jax.random.normal(ks, (1, raw_state_dim), jnp.float32)
    act_state = jnp.concatenate([image_feat[None, :], raw_state, raw_state, raw_state], axis=1)
    noise = jax.random.normal(kn, (1, action_dim), jnp.float32)
    action, act_logp = act_fn(params, act_state, noise)
    jax.block_until_ready((action, act_logp))

    # --- evaluate() path ---
    states = jax.random.normal(ka, (batch, state_dim), jnp.float32)
    actions = jnp.tanh(states[:, :action_dim])  # deterministic actions of the right shape
    logps, values, entropy = evaluate_fn(params, states, actions)
    jax.block_until_ready((logps, values, entropy))

    assert action.shape == (1, action_dim)
    assert act_logp.shape == (1,)
    assert logps.shape == (batch,) and values.shape == (batch,) and entropy.shape == (batch,)
    print("KERNEL_OK")
</pallas_src>

<mosaic_0001>
module attributes {stable_mosaic.version = 11 : i64} {
  func.func @act_kernel(%arg0: i32, %arg1: memref<8x128xf32, #tpu.memory_space<vmem>>, %arg2: memref<8x128xf32, #tpu.memory_space<vmem>>, %arg3: memref<4x128x128xbf16, #tpu.memory_space<vmem>>, %arg4: memref<8x128xf32, #tpu.memory_space<vmem>>, %arg5: memref<8x128xf32, #tpu.memory_space<vmem>>) attributes {dimension_semantics = [#tpu.dimension_semantics<parallel>], iteration_bounds = array<i64: 1>, scalar_prefetch = 0 : i64, scratch_operands = 0 : i64, tpu.core_type = #tpu.core_type<tc>, window_params = [{transform_indices = @transform_0, window_bounds = array<i64: 8, 128>}, {transform_indices = @transform_1, window_bounds = array<i64: 8, 128>}, {pipeline_mode = #tpu.pipeline_mode<synchronous>, transform_indices = @transform_2, window_bounds = array<i64: 4, 128, 128>}, {pipeline_mode = #tpu.pipeline_mode<synchronous>, transform_indices = @transform_3, window_bounds = array<i64: 8, 128>}, {transform_indices = @transform_4, window_bounds = array<i64: 8, 128>}]} {
    %c0 = arith.constant 0 : index
    %c0_0 = arith.constant 0 : index
    %0 = vector.load %arg4[%c0, %c0_0] : memref<8x128xf32, #tpu.memory_space<vmem>>, vector<8x128xf32>
    %1 = vector.extract_strided_slice %0 {offsets = [0, 0], sizes = [4, 128], strides = [1, 1]} : vector<8x128xf32> to vector<4x128xf32>
    %2 = vector.extract_strided_slice %0 {offsets = [5, 0], sizes = [1, 128], strides = [1, 1]} : vector<8x128xf32> to vector<1x128xf32>
    %3 = vector.extract_strided_slice %0 {offsets = [6, 0], sizes = [1, 128], strides = [1, 1]} : vector<8x128xf32> to vector<1x128xf32>
    %c0_1 = arith.constant 0 : index
    %c0_2 = arith.constant 0 : index
    %4 = vector.load %arg1[%c0_1, %c0_2] : memref<8x128xf32, #tpu.memory_space<vmem>>, vector<8x128xf32>
    %c0_3 = arith.constant 0 : index
    %c0_4 = arith.constant 0 : index
    %c0_5 = arith.constant 0 : index
    %5 = vector.load %arg3[%c0_3, %c0_4, %c0_5] : memref<4x128x128xbf16, #tpu.memory_space<vmem>>, vector<1x128x128xbf16>
    %6 = vector.shape_cast %5 : vector<1x128x128xbf16> to vector<128x128xbf16>
    %7 = arith.truncf %4 : vector<8x128xf32> to vector<8x128xbf16>
    %cst = arith.constant dense<0.000000e+00> : vector<8x128xf32>
    %8 = tpu.matmul %7, %6, %cst {dimension_numbers = #tpu.dot_dimension_numbers<[1], [0], [0], [1], [0, 0, 1, 1], [], []>} : vector<8x128xbf16>, vector<128x128xbf16>, vector<8x128xf32> -> vector<8x128xf32>
    %9 = vector.extract_strided_slice %1 {offsets = [0, 0], sizes = [1, 128], strides = [1, 1]} : vector<4x128xf32> to vector<1x128xf32>
    %10 = vector.broadcast %9 : vector<1x128xf32> to vector<8x128xf32>
    %11 = arith.addf %8, %10 : vector<8x128xf32>
    %cst_6 = arith.constant 0.000000e+00 : f32
    %12 = vector.broadcast %cst_6 : f32 to vector<8x128xf32>
    %13 = arith.maximumf %11, %12 : vector<8x128xf32>
    %c1 = arith.constant 1 : index
    %c0_7 = arith.constant 0 : index
    %c0_8 = arith.constant 0 : index
    %14 = vector.load %arg3[%c1, %c0_7, %c0_8] : memref<4x128x128xbf16, #tpu.memory_space<vmem>>, vector<1x128x128xbf16>
    %15 = vector.shape_cast %14 : vector<1x128x128xbf16> to vector<128x128xbf16>
    %16 = arith.truncf %13 : vector<8x128xf32> to vector<8x128xbf16>
    %cst_9 = arith.constant dense<0.000000e+00> : vector<8x128xf32>
    %17 = tpu.matmul %16, %15, %cst_9 {dimension_numbers = #tpu.dot_dimension_numbers<[1], [0], [0], [1], [0, 0, 1, 1], [], []>} : vector<8x128xbf16>, vector<128x128xbf16>, vector<8x128xf32> -> vector<8x128xf32>
    %18 = vector.extract_strided_slice %1 {offsets = [1, 0], sizes = [1, 128], strides = [1, 1]} : vector<4x128xf32> to vector<1x128xf32>
    %19 = vector.broadcast %18 : vector<1x128xf32> to vector<8x128xf32>
    %20 = arith.addf %17, %19 : vector<8x128xf32>
    %cst_10 = arith.constant 0.000000e+00 : f32
    %21 = vector.broadcast %cst_10 : f32 to vector<8x128xf32>
    %22 = arith.maximumf %20, %21 : vector<8x128xf32>
    %c2 = arith.constant 2 : index
    %c0_11 = arith.constant 0 : index
    %c0_12 = arith.constant 0 : index
    %23 = vector.load %arg3[%c2, %c0_11, %c0_12] : memref<4x128x128xbf16, #tpu.memory_space<vmem>>, vector<1x128x128xbf16>
    %24 = vector.shape_cast %23 : vector<1x128x128xbf16> to vector<128x128xbf16>
    %25 = arith.truncf %22 : vector<8x128xf32> to vector<8x128xbf16>
    %cst_13 = arith.constant dense<0.000000e+00> : vector<8x128xf32>
    %26 = tpu.matmul %25, %24, %cst_13 {dimension_numbers = #tpu.dot_dimension_numbers<[1], [0], [0], [1], [0, 0, 1, 1], [], []>} : vector<8x128xbf16>, vector<128x128xbf16>, vector<8x128xf32> -> vector<8x128xf32>
    %27 = vector.extract_strided_slice %1 {offsets = [2, 0], sizes = [1, 128], strides = [1, 1]} : vector<4x128xf32> to vector<1x128xf32>
    %28 = vector.broadcast %27 : vector<1x128xf32> to vector<8x128xf32>
    %29 = arith.addf %26, %28 : vector<8x128xf32>
    %cst_14 = arith.constant 0.000000e+00 : f32
    %30 = vector.broadcast %cst_14 : f32 to vector<8x128xf32>
    %31 = arith.maximumf %29, %30 : vector<8x128xf32>
    %c3 = arith.constant 3 : index
    %c0_15 = arith.constant 0 : index
    %c0_16 = arith.constant 0 : index
    %32 = vector.load %arg3[%c3, %c0_15, %c0_16] : memref<4x128x128xbf16, #tpu.memory_space<vmem>>, vector<1x128x128xbf16>
    %33 = vector.shape_cast %32 : vector<1x128x128xbf16> to vector<128x128xbf16>
    %34 = arith.truncf %31 : vector<8x128xf32> to vector<8x128xbf16>
    %cst_17 = arith.constant dense<0.000000e+00> : vector<8x128xf32>
    %35 = tpu.matmul %34, %33, %cst_17 {dimension_numbers = #tpu.dot_dimension_numbers<[1], [0], [0], [1], [0, 0, 1, 1], [], []>} : vector<8x128xbf16>, vector<128x128xbf16>, vector<8x128xf32> -> vector<8x128xf32>
    %36 = vector.extract_strided_slice %1 {offsets = [3, 0], sizes = [1, 128], strides = [1, 1]} : vector<4x128xf32> to vector<1x128xf32>
    %37 = vector.broadcast %36 : vector<1x128xf32> to vector<8x128xf32>
    %38 = arith.addf %35, %37 : vector<8x128xf32>
    %39 = math.tanh %38 : vector<8x128xf32>
    %c0_18 = arith.constant 0 : index
    %c0_19 = arith.constant 0 : index
    %40 = vector.load %arg2[%c0_18, %c0_19] : memref<8x128xf32, #tpu.memory_space<vmem>>, vector<8x128xf32>
    %41 = vector.broadcast %2 : vector<1x128xf32> to vector<8x128xf32>
    %42 = arith.mulf %41, %40 : vector<8x128xf32>
    %43 = arith.addf %39, %42 : vector<8x128xf32>
    %44 = arith.mulf %40, %40 : vector<8x128xf32>
    %cst_20 = arith.constant dense<0.000000e+00> : vector<8xf32>
    %45 = vector.multi_reduction <add>, %44, %cst_20 [1] : vector<8x128xf32> to vector<8xf32>
    %46 = vector.shape_cast %45 : vector<8xf32> to vector<8x1xf32>
    %47 = vector.broadcast %46 : vector<8x1xf32> to vector<8x128xf32>
    %48 = vector.broadcast %3 : vector<1x128xf32> to vector<8x128xf32>
    %49 = arith.addf %47, %48 : vector<8x128xf32>
    %cst_21 = arith.constant -5.000000e-01 : f32
    %50 = vector.broadcast %cst_21 : f32 to vector<8x128xf32>
    %51 = arith.mulf %50, %49 : vector<8x128xf32>
    %52 = tpu.iota {dimensions = array<i32: 1>} : vector<8x128xi32>
    %c4_i32 = arith.constant 4 : i32
    %53 = vector.broadcast %c4_i32 : i32 to vector<8x128xi32>
    %54 = arith.cmpi eq, %52, %53 : vector<8x128xi32>
    %55 = arith.select %54, %51, %43 : vector<8x128xi1>, vector<8x128xf32>
    %c0_22 = arith.constant 0 : index
    %c0_23 = arith.constant 0 : index
    %56 = vector.load %arg5[%c0_22, %c0_23] : memref<8x128xf32, #tpu.memory_space<vmem>>, vector<8x128xf32>
    tpu.vector_store %arg5[%c0_22, %c0_23], %55 {strides = array<i32>} : memref<8x128xf32, #tpu.memory_space<vmem>>, vector<8x128xf32>,
    return
  }
  func.func @transform_0(%arg0: i32) -> (i32, i32) {
    %c0_i32 = arith.constant 0 : i32
    %c0_i32_0 = arith.constant 0 : i32
    return %arg0, %c0_i32 : i32, i32
  }
  func.func @transform_1(%arg0: i32) -> (i32, i32) {
    %c0_i32 = arith.constant 0 : i32
    %c0_i32_0 = arith.constant 0 : i32
    return %arg0, %c0_i32 : i32, i32
  }
  func.func @transform_2(%arg0: i32) -> (i32, i32, i32) {
    %c0_i32 = arith.constant 0 : i32
    %c0_i32_0 = arith.constant 0 : i32
    %c0_i32_1 = arith.constant 0 : i32
    %c0_i32_2 = arith.constant 0 : i32
    return %c0_i32, %c0_i32_0, %c0_i32_1 : i32, i32, i32
  }
  func.func @transform_3(%arg0: i32) -> (i32, i32) {
    %c0_i32 = arith.constant 0 : i32
    %c0_i32_0 = arith.constant 0 : i32
    %c0_i32_1 = arith.constant 0 : i32
    return %c0_i32, %c0_i32_0 : i32, i32
  }
  func.func @transform_4(%arg0: i32) -> (i32, i32) {
    %c0_i32 = arith.constant 0 : i32
    %c0_i32_0 = arith.constant 0 : i32
    return %arg0, %c0_i32 : i32, i32
  }
}

</mosaic_0001>

<bundles_post_ra>
// kernel: tpu_custom_call.1
= control target key start
LH: loop header
LB: loop body
LE: loop exit
PB: predicated region body
PF: predicated region fallthrough
CT: control target
= control target key end

     0   :  { %9 = vsyncpa [#allocation3], 0  ;;  %s778_s0 = inlined_call_operand.hbm [shape: f32[8,128], index: 0, kind: input, shape index: {}]   ;;  %s779_s1 = inlined_call_operand.hbm [shape: f32[8,128], index: 1, kind: input, shape index: {}]   ;;  %s780_s2 = inlined_call_operand.hbm [shape: bf16[4,128,128], index: 2, kind: input, shape index: {}]   ;;  %s781_s3 = inlined_call_operand.hbm [shape: f32[8,128], index: 3, kind: input, shape index: {}]   ;;  %s782_s4 = inlined_call_operand.hbm [shape: f32[8,128], index: 4, kind: output, shape index: {}]  }
   0x1   :  { %10 = vsyncpa [#allocation6], 0 }
   0x2   :  { %11 = vsyncpa [#allocation9], 0  ;;  %s29_s17 = sshll.u32 %s779_s1, 4  ;;  %s30_s17 = int_to_ptr.hbm [resolvable:$true] %s29_s17 }
   0x3   :  { %12 = vsyncpa [#allocation4], 0  ;;  %s731_s18 = smov [#allocation5]   ;;  %s18_s22 = sshll.u32 %s778_s0, 4  ;;  %s19_s22 = int_to_ptr.hbm [resolvable:$true] %s18_s22 }
   0x4   :  { %s31_s19 = sshll.u32 %s731_s18, 4  ;;  %s732_s23 = smov [#allocation2]   ;;  %s32_s19 = int_to_ptr.vmem [resolvable:$true] %s31_s19 }
   0x5   :  { %34 = dma.hbm_to_vmem [thread:$0]  %s30_s17, 128, %s32_s19, [#allocation6]  }
   0x6   :  { %s20_s24 = sshll.u32 %s732_s23, 4  ;;  %s39_s27 = sshll.u32 %s780_s2, 4  ;;  %s21_s24 = int_to_ptr.vmem [resolvable:$true] %s20_s24  ;;  %s40_s27 = int_to_ptr.hbm [resolvable:$true] %s39_s27 }
   0x7   :  { %23 = dma.hbm_to_vmem [thread:$0]  %s19_s22, 128, %s21_s24, [#allocation3]  }
   0x8   :  { %s733_s1 = smov [#allocation7]   ;;  %s53_s5 = sshll.u32 %s781_s3, 4  ;;  %s54_s5 = int_to_ptr.hbm [resolvable:$true] %s53_s5 }
   0x9   :  { %s41_s28 = sshll.u32 %s733_s1, 4  ;;  %s734_s6 = smov 64   ;;  %s42_s28 = int_to_ptr.vmem [resolvable:$true] %s41_s28 }
   0xa   :  { %s735_s0 = smov 4   ;;  %s736_s7 = smov [#allocation8]  }
   0xb   :  { %47 = dma.hbm_to_vmem [thread:$0]  %s40_s27, 4096, %s42_s28, [#allocation6], %s734_s6, %s734_s6, %s735_s0  }
   0xc   :  { %s55_s8 = sshll.u32 %s736_s7, 4  ;;  %s56_s8 = int_to_ptr.vmem [resolvable:$true] %s55_s8 }
   0xd   :  { %58 = dma.hbm_to_vmem [thread:$0]  %s54_s5, 128, %s56_s8, [#allocation9]  }
   0xe   :  { %723 = dma.done.wait [#allocation3], 128  }
   0xf   :  { %724 = vsyncadd [#allocation3], 4294967168 }
  0x10   :  { %725 = dma.done.wait [#allocation6], 4224  }
  0x11   :  { %726 = vsyncadd [#allocation6], 4294963072 }
  0x12   :  { %727 = dma.done.wait [#allocation9], 128  }
  0x13   :  { %728 = vsyncadd [#allocation9], 4294967168  ;;  %v569_v0 = vld [vmem:[#allocation7 + $0x38] sm:$0xff]  ;;  %v568_v1 = vld [vmem:[#allocation7 + $0x30] sm:$0xff]  ;;  %v410_v60 = vlaneseq  ;;  %s737_s2 = smov [#allocation10]   ;;  %s422_s11 = sshll.u32 %s782_s4, 4  ;;  %s423_s11 = int_to_ptr.hbm [resolvable:$true] %s422_s11 }
  0x14   :  { %143 = vmatpush.bf16.msra.mxu0 %v569_v0  ;;  %v577_v2 = vld [vmem:[#allocation7 + $0x78] sm:$0xff]  ;;  %v576_v3 = vld [vmem:[#allocation7 + $0x70] sm:$0xff]  ;;  %v567_v4 = vld [vmem:[#allocation7 + $0x28] sm:$0xff]  ;;  %s420_s3 = sshll.u32 %s737_s2, 4  ;;  %s421_s3 = int_to_ptr.vmem [resolvable:$true] %s420_s3 }
  0x15   :  { %224 = vmatpush.bf16.msra.mxu1 %v577_v2  ;;  %v575_v5 = vld [vmem:[#allocation7 + $0x68] sm:$0xff]  ;;  %v566_v6 = vld [vmem:[#allocation7 + $0x20] sm:$0xff]  ;;  %v565_v8 = vld [vmem:[#allocation7 + $0x18] sm:$0xff]  ;;  %v411_v63 = vand.u32 127, %v410_v60 }
  0x16   :  { %v574_v7 = vld [vmem:[#allocation7 + $0x60] sm:$0xff]  ;;  %v573_v9 = vld [vmem:[#allocation7 + $0x58] sm:$0xff]  ;;  %v564_v10 = vld [vmem:[#allocation7 + $0x10] sm:$0xff] }
  0x17   :  { %v572_v11 = vld [vmem:[#allocation7 + $0x50] sm:$0xff]  ;;  %v563_v12 = vld [vmem:[#allocation7 + $0x8] sm:$0xff]  ;;  %v562_v13 = vld [vmem:[#allocation7] sm:$0xff]  ;;  %vm412_vm0 = vcmp.eq.s32.totalorder %v411_v63, 4 }
  0x18   :  { %144 = vmatpush.bf16.msra.mxu0 %v568_v1  ;;  %v76_v14 = vld [vmem:[#allocation2] sm:$0xff]  ;;  %v571_v16 = vld [vmem:[#allocation7 + $0x48] sm:$0xff]  ;;  %v570_v17 = vld [vmem:[#allocation7 + $0x40] sm:$0xff] }
  0x19   :  { %225 = vmatpush.bf16.msra.mxu1 %v576_v3  ;;  %v93_v15 = vpack.c.bf16 %v76_v14, %v76_v14  ;;  %v585_v18 = vld [vmem:[#allocation7 + $0xb8] sm:$0xff]  ;;  %v584_v19 = vld [vmem:[#allocation7 + $0xb0] sm:$0xff]  ;;  %v583_v20 = vld [vmem:[#allocation7 + $0xa8] sm:$0xff] }
  0x1a   :  { %305 = vmatpush.bf16.msra.mxu2 %v585_v18  ;;  %v582_v21 = vld [vmem:[#allocation7 + $0xa0] sm:$0xff]  ;;  %v581_v22 = vld [vmem:[#allocation7 + $0x98] sm:$0xff]  ;;  %v580_v24 = vld [vmem:[#allocation7 + $0x90] sm:$0xff] }
  0x1b   :  { %v75_v23 = vld [vmem:[#allocation8] sm:$0xff]  ;;  %v579_v31 = vld [vmem:[#allocation7 + $0x88] sm:$0xff]  ;;  %v593_v33 = vld [vmem:[#allocation7 + $0xf8] sm:$0xff] }
  0x1c   :  { %145 = vmatpush.bf16.msra.mxu0 %v567_v4  ;;  %v94_v25 = vperm.slane %v75_v23, 0  ;;  %v578_v32 = vld [vmem:[#allocation7 + $0x80] sm:$0xff]  ;;  %386 = vmatpush.bf16.msra.mxu3 %v593_v33  ;;  %v592_v34 = vld [vmem:[#allocation7 + $0xf0] sm:$0xff]  ;;  %v591_v35 = vld [vmem:[#allocation7 + $0xe8] sm:$0xff]  ;;  %v175_v39 = vperm.slane %v75_v23, 1  ;;  %v256_v49 = vperm.slane %v75_v23, 2 }
  0x1d   :  { %226 = vmatpush.bf16.msra.mxu1 %v575_v5  ;;  %v590_v36 = vld [vmem:[#allocation7 + $0xe0] sm:$0xff]  ;;  %v589_v37 = vld [vmem:[#allocation7 + $0xd8] sm:$0xff]  ;;  %v588_v38 = vld [vmem:[#allocation7 + $0xd0] sm:$0xff]  ;;  %v337_v55 = vperm.slane %v75_v23, 3  ;;  %v407_v57 = vperm.slane %v75_v23, 6  ;;  %v401_v61 = vperm.slane %v75_v23, 5 }
  0x1e   :  { %306 = vmatpush.bf16.msra.mxu2 %v584_v19  ;;  %v587_v45 = vld [vmem:[#allocation7 + $0xc8] sm:$0xff]  ;;  %v586_v46 = vld [vmem:[#allocation7 + $0xc0] sm:$0xff]  ;;  %v400_v47 = vld [vmem:[#allocation5] sm:$0xff] }
  0x1f   :  { %v404_v48 = vmul.f32 %v400_v47, %v400_v47  ;;  %v402_v0 = vmul.f32 %v401_v61, %v400_v47 }
  0x20   :  { %146 = vmatpush.bf16.msra.mxu0 %v566_v6  ;;  %387 = vmatpush.bf16.msra.mxu3 %v592_v34 }
  0x21   :  { %227 = vmatpush.bf16.msra.mxu1 %v574_v7  ;;  %405 = vadd.xlane.f32.xlu0 %v404_v48 }
  0x22   :  { %307 = vmatpush.bf16.msra.mxu2 %v583_v20 }
  0x24   :  { %147 = vmatpush.bf16.msra.mxu0 %v565_v8  ;;  %388 = vmatpush.bf16.msra.mxu3 %v591_v35 }
  0x25   :  { %228 = vmatpush.bf16.msra.mxu1 %v573_v9 }
  0x26   :  { %308 = vmatpush.bf16.msra.mxu2 %v582_v21 }
  0x28   :  { %148 = vmatpush.bf16.msra.mxu0 %v564_v10  ;;  %389 = vmatpush.bf16.msra.mxu3 %v590_v36 }
  0x29   :  { %229 = vmatpush.bf16.msra.mxu1 %v572_v11 }
  0x2a   :  { %309 = vmatpush.bf16.msra.mxu2 %v581_v22 }
  0x2c   :  { %149 = vmatpush.bf16.msra.mxu0 %v563_v12  ;;  %390 = vmatpush.bf16.msra.mxu3 %v589_v37 }
  0x2d   :  { %230 = vmatpush.bf16.msra.mxu1 %v571_v16 }
  0x2e   :  { %310 = vmatpush.bf16.msra.mxu2 %v580_v24 }
  0x30   :  { %150 = vmatpush.bf16.msra.mxu0 %v562_v13  ;;  %391 = vmatpush.bf16.msra.mxu3 %v588_v38 }
  0x31   :  { %231 = vmatpush.bf16.msra.mxu1 %v570_v17 }
  0x32   :  { %311 = vmatpush.bf16.msra.mxu2 %v579_v31 }
  0x33   :  { %151 = vmatmul.bf16.vlgmr.msra.gmra.mxu0 %v93_v15 }
  0x34   :  { %392 = vmatpush.bf16.msra.mxu3 %v587_v45 }
  0x36   :  { %312 = vmatpush.bf16.msra.mxu2 %v578_v32 }
  0x38   :  { %393 = vmatpush.bf16.msra.mxu3 %v586_v46 }
  0x94   :  { %v406_v59 = vpop.xlane.xlu0 %405 }
  0x95   :  { %v408_v62 = vadd.f32 %v407_v57, %v406_v59 }
  0x97   :  { %v409_v1 = vmul.f32 -0.5, %v408_v62 }
  0xb0   :  { %v152_v26 = vpop.f32.mrf.mxu0 }
  0xb1   :  { %v153_v27 = vadd.f32 %v152_v26, %v94_v25 }
  0xb3   :  { %v156_v28 = vmax.f32 %v153_v27, 0.0 }
  0xb5   :  { %v174_v29 = vpack.c.bf16 %v156_v28, %v156_v28 }
  0xb7   :  { %232 = vmatmul.bf16.vlgmr.msra.gmra.mxu1 %v174_v29 }
  0xb8   :  { %v154_v30 = vpop.f32.mrf.mxu0 }
 0x134   :  { %v233_v40 = vpop.f32.mrf.mxu1 }
 0x135   :  { %v234_v41 = vadd.f32 %v233_v40, %v175_v39 }
 0x137   :  { %v237_v42 = vmax.f32 %v234_v41, 0.0 }
 0x139   :  { %v255_v43 = vpack.c.bf16 %v237_v42, %v237_v42 }
 0x13b   :  { %313 = vmatmul.bf16.vlgmr.msra.gmra.mxu2 %v255_v43 }
 0x13c   :  { %v235_v44 = vpop.f32.mrf.mxu1 }
 0x1be   :  { %v314_v50 = vpop.f32.mrf.mxu2 }
 0x1bf   :  { %v315_v51 = vadd.f32 %v314_v50, %v256_v49 }
 0x1c1   :  { %v318_v52 = vmax.f32 %v315_v51, 0.0 }
 0x1c3   :  { %v336_v53 = vpack.c.bf16 %v318_v52, %v318_v52 }
 0x1c5   :  { %394 = vmatmul.bf16.vlgmr.msra.gmra.mxu3 %v336_v53 }
 0x1c6   :  { %v316_v54 = vpop.f32.mrf.mxu2 }
 0x248   :  { %v395_v56 = vpop.f32.mrf.mxu3 }
 0x249   :  { %v396_v58 = vadd.f32 %v395_v56, %v337_v55 }
 0x24b   :  { %601 = vtanh.f32 %v396_v58 }
 0x250   :  { %v397_v2 = vpop.f32.mrf.mxu3 }
 0x251   :  { %v602_v3 = vpop.eup %601 }
 0x252   :  { %v403_v4 = vadd.f32 %v602_v3, %v402_v0 }
 0x254   :  { %v413_v5 = vsel %vm412_vm0, %v409_v1, %v403_v4 }
 0x255   :  { %414 = vst [vmem:[#allocation10] sm:$0xff] %v413_v5 }
 0x256   :  { %425 = dma.vmem_to_hbm [thread:$0]  %s421_s3, 128, %s423_s11, [#allocation4]  }
 0x257   :  { %729 = dma.done.wait [#allocation4], 128  }
 0x258   :  { %730 = vsyncadd [#allocation4], 4294967168 }
 0x259   :  { %430 = vsyncpa [#allocation3], 1 }
 0x25a   :  { %431 = vsyncpa [#allocation6], 1 }
 0x25b   :  { %432 = vsyncpa [#allocation9], 1 }
 0x25c   :  { %433 = vsyncpa [#allocation4], 1 }

</bundles_post_ra>
